<compile_context>
chip_gen: v7x
topology: tpu7x:2x2x1
jax: 0.10.0
libtpu: 0.0.40
codegen_flags: <defaults>
</compile_context>

<pallas_src>
import jax
import jax.numpy as jnp
from jax.experimental import pallas as pl
from jax.experimental.pallas import tpu as pltpu

_LANES = 128
_SUBLANES = 8


def _make_count_kernel(*, rows_total, block_rows, chunk_rows, needs_mask):
    """Per-block positive-count kernel factory (all sizes are static Python ints)."""
    num_chunks = block_rows // chunk_rows

    def kernel(x_ref, acc_ref):
        step = pl.program_id(1)

        @pl.when(step == 0)
        def _init():
            acc_ref[...] = jnp.zeros_like(acc_ref)

        if needs_mask:
            block_idx = pl.program_id(0) * pl.num_programs(1) + step
            # Rows of this block holding real data (<= 0 for split round-up blocks).
            row_limit = rows_total - block_idx * block_rows
            # Hoisted out of the chunk loop (JAX does not CSE broadcast_in_dim).
            row_iota = jax.lax.broadcasted_iota(jnp.int32, (chunk_rows, _LANES), 0)

        def body(c, acc):
            r0 = pl.multiple_of(c * chunk_rows, chunk_rows)
            chunk = x_ref[pl.ds(r0, chunk_rows), :]        # (chunk_rows, 128), native dtype
            pos = chunk > 0                                # VPU compare, dtype-agnostic
            if needs_mask:
                # Pallas does NOT zero-fill partial blocks -> mask stale tail rows.
                pos = jnp.logical_and(pos, row_iota < (row_limit - r0))
            ones = pos.astype(jnp.int32).reshape(-1, _SUBLANES, _LANES)
            return acc + jnp.sum(ones, axis=0)             # lane-wise vreg adds only

        partial = jax.lax.fori_loop(
            0, num_chunks, body, jnp.zeros((_SUBLANES, _LANES), jnp.int32))
        acc_ref[...] += partial[None]

    return kernel


def _positive_count(x, *, block_bytes=4 << 20, chunk_bytes=64 << 10,
                    num_core_splits=1, core_parallel=True,
                    min_kernel_elems=1 << 18):
    """Exact count of elements > 0 in a 2-D embedding table via a Pallas HBM scan."""
    total = int(x.size)

    # Small-table fast path (also covers the rare table whose size isn't a multiple of
    # 128 lanes): the pallas_call launch + DMA setup dwarfs the scan there.
    if total < min_kernel_elems or total % _LANES != 0:
        return jnp.sum((x > 0).astype(jnp.int32))

    itemsize = int(x.dtype.itemsize)
    rows = total // _LANES                                 # lane-dense rows of 128 elems
    x2 = x.reshape(rows, _LANES)                           # free row-major reshape, no copy

    # Sublane packing multiple (f32: 8, bf16: 16, int8: 32).
    pack = _SUBLANES * max(1, 4 // itemsize)
    # Chunk = inner-loop tile kept vreg-resident (default 64 KiB -> ~16 data vregs).
    chunk_rows = max(pack, (chunk_bytes // (_LANES * itemsize)) // pack * pack)
    # Block = HBM->VMEM DMA granule, sized by BYTES (default 4 MiB; the double-buffered
    # 8 MiB footprint fits every generation's default scoped-VMEM limit, incl. v5e).
    target_rows = max(chunk_rows,
                      (block_bytes // (_LANES * itemsize)) // chunk_rows * chunk_rows)
    # Never let the block exceed the array extent (floor to a chunk multiple).
    block_rows = min(target_rows, max(chunk_rows, (rows // chunk_rows) * chunk_rows))

    n_blocks = pl.cdiv(rows, block_rows)
    num_splits = max(1, min(num_core_splits, n_blocks))
    steps = pl.cdiv(n_blocks, num_splits)
    # Ragged tail or split round-up -> some rows seen by the last block(s) are not real
    # data and must be masked in-kernel.
    needs_mask = (num_splits * steps * block_rows) != rows

    if num_splits * steps > n_blocks:
        # Excess blocks (split round-up) re-read the last valid block; their program-id
        # derived row offset is past the data, so the in-kernel mask zeroes them out.
        def in_map(c, i):
            return (jnp.minimum(c * steps + i, n_blocks - 1), 0)
    else:
        def in_map(c, i):
            return (c * steps + i, 0)

    kernel = _make_count_kernel(rows_total=rows, block_rows=block_rows,
                                chunk_rows=chunk_rows, needs_mask=needs_mask)

    if num_splits > 1 and core_parallel:
        # v7x: shard the leading split axis across the chip's two TensorCores.
        dims = (pltpu.CORE_PARALLEL, pltpu.ARBITRARY)
    else:
        dims = ("arbitrary", "arbitrary")

    dbl_buf_bytes = 2 * block_rows * _LANES * itemsize
    compiler_params = pltpu.CompilerParams(
        dimension_semantics=dims,
        # Only raise the scoped-VMEM limit if a caller asked for unusually large blocks.
        vmem_limit_bytes=(dbl_buf_bytes + (4 << 20)) if dbl_buf_bytes > (12 << 20) else None,
    )

    partials = pl.pallas_call(
        kernel,
        out_shape=jax.ShapeDtypeStruct((num_splits, _SUBLANES, _LANES), jnp.int32),
        grid_spec=pltpu.PrefetchScalarGridSpec(
            num_scalar_prefetch=0,
            grid=(num_splits, steps),
            in_specs=[pl.BlockSpec((block_rows, _LANES), in_map)],
            # Per-split resident accumulator block, revisited along the inner axis only.
            out_specs=pl.BlockSpec((1, _SUBLANES, _LANES), lambda c, i: (c, 0, 0)),
        ),
        compiler_params=compiler_params,
    )(x2)

    # Single cross-lane reduce, outside the hot loop (tiny: num_splits x 8 x 128).
    return jnp.sum(partials)


def level_wise_context_model_forward(embeddings_list, level, weight, bias, *,
                                     use_binarization=True, expand=True,
                                     block_bytes=4 << 20, chunk_bytes=64 << 10,
                                     num_core_splits=1, core_parallel=True):
    """JAX/Pallas equivalent of LevelWiseContextModel.forward.

    embeddings_list : list of (N_l, F) arrays (any float/int dtype)
    level           : int, which level's embeddings to use
    weight          : (H, 1) PyTorch-style Linear weight;  bias: (H,)
    num_core_splits : set to 2 on v7x (2 TensorCores/chip) to core-shard the scan;
                      leave at 1 on v5e/v6e.
    """
    x = embeddings_list[level]
    assert x.ndim == 2, "embeddings are (N, feature_dim)"
    n = x.shape[0]
    h = weight.shape[0]

    if use_binarization:
        count = _positive_count(x, block_bytes=block_bytes, chunk_bytes=chunk_bytes,
                                num_core_splits=num_core_splits,
                                core_parallel=core_parallel)
        freq = count.astype(jnp.float32) / jnp.float32(float(x.size) + 1e-8)
    else:
        # Non-binarized branch of calculate_frequency: a plain XLA mean (not a kernel).
        freq = jnp.mean(x.astype(jnp.float32))

    # Linear(1 -> H) + LeakyReLU(0.2): scalar-to-vector affine kept in the wrapper.
    w = jnp.asarray(weight, jnp.float32).reshape(h)          # PyTorch (H, 1) -> (H,)
    b = jnp.asarray(bias, jnp.float32).reshape(h)
    y = freq * w + b
    probs = jnp.where(y >= 0.0, y, jnp.float32(0.2) * y).reshape(1, h)

    if expand and n > 1:
        # torch-style .expand; stays a lazy broadcast view under jit.
        probs = jnp.broadcast_to(probs, (n, h))
    return probs


def _reference_forward(embeddings_list, level, weight, bias):
    x = embeddings_list[level]
    pos = jnp.sum((x > 0).astype(jnp.float32))
    freq = pos / jnp.float32(float(x.size) + 1e-8)
    y = freq * jnp.asarray(weight, jnp.float32).reshape(-1) \
        + jnp.asarray(bias, jnp.float32).reshape(-1)
    y = jnp.where(y >= 0.0, y, 0.2 * y).reshape(1, -1)
    if x.shape[0] > 1:
        y = jnp.broadcast_to(y, (x.shape[0], y.shape[1]))
    return y


if __name__ == "__main__":
    key = jax.random.PRNGKey(0)
    k0, k1, k2, k3, kw, kb = jax.random.split(key, 6)

    feature_dim = 8
    hidden = 32            # config.context_fuser_hidden

    # Synthetic hash-table slices per level. Level 0 is tiny (XLA fast path); the others
    # are kept modest (<= 2 MiB) but big enough to exercise the Pallas scan, including
    # ragged row counts (in-kernel tail masking) and a packed bf16 table.
    embeddings_list = [
        jnp.sign(jax.random.normal(k0, (256, feature_dim))).astype(jnp.bfloat16),
        jnp.sign(jax.random.normal(k1, (1 << 16, feature_dim))).astype(jnp.float32),
        jax.random.normal(k2, (36000, feature_dim), dtype=jnp.float32),
        jnp.sign(jax.random.normal(k3, (40000, feature_dim))).astype(jnp.bfloat16),
    ]

    # Deterministic Linear(1, 32) params (PyTorch-style shapes: W (H,1), b (H,)).
    bound = 1.0  # 1/sqrt(in_features) with in_features=1
    weight = jax.random.uniform(kw, (hidden, 1), minval=-bound, maxval=bound)
    bias = jax.random.uniform(kb, (hidden,), minval=-bound, maxval=bound)

    checks = [
        (0, {}),                                      # tiny table -> XLA fast path
        (1, {}),                                      # 2 MiB f32, single full block
        (1, {"block_bytes": 1 << 20}),                # multi-step grid, resident accumulator
        (2, {}),                                      # ragged rows -> partial block + mask
        (2, {"block_bytes": 1 << 19}),                # multi-step + masked tail block
        (2, {"block_bytes": 1 << 19,                  # 2-way split path (serial semantics
             "num_core_splits": 2,                    #  here; CORE_PARALLEL on v7x)
             "core_parallel": False}),
        (3, {}),                                      # bf16 packing + masked tail
    ]
    # TODO(synk): on v7x pass num_core_splits=2 (default core_parallel=True) to shard
    # the scan across both TensorCores; left off here so the demo runs on any chip.
    for level, kwargs in checks:
        out = level_wise_context_model_forward(
            embeddings_list, level, weight, bias, **kwargs)
        out = jax.block_until_ready(out)
        ref = _reference_forward(embeddings_list, level, weight, bias)
        n = embeddings_list[level].shape[0]
        assert out.shape == (n, hidden), out.shape
        assert jnp.allclose(out, ref, atol=1e-5, rtol=1e-5), \
            f"mismatch at level={level}, kwargs={kwargs}"

    print("KERNEL_OK")
</pallas_src>

<mosaic_0001>
module attributes {stable_mosaic.version = 11 : i64} {
  func.func @kernel(%arg0: i32, %arg1: i32, %arg2: memref<4096x128xf32, #tpu.memory_space<vmem>>, %arg3: memref<1x8x128xi32, #tpu.memory_space<vmem>>) attributes {dimension_semantics = [#tpu.dimension_semantics<arbitrary>, #tpu.dimension_semantics<arbitrary>], iteration_bounds = array<i64: 1, 1>, scalar_prefetch = 0 : i64, scratch_operands = 0 : i64, tpu.core_type = #tpu.core_type<tc>, window_params = [{transform_indices = @transform_0, window_bounds = array<i64: 4096, 128>}, {transform_indices = @transform_1, window_bounds = array<i64: 1, 8, 128>}]} {
    %c0_i32 = arith.constant 0 : i32
    %0 = arith.cmpi eq, %arg1, %c0_i32 : i32
    %1 = arith.extui %0 : i1 to i32
    %c0_i32_0 = arith.constant 0 : i32
    %2 = arith.cmpi ne, %1, %c0_i32_0 : i32
    scf.if %2 {
      %c0_i32_9 = arith.constant 0 : i32
      %10 = vector.broadcast %c0_i32_9 : i32 to vector<1x8x128xi32>
      %c0_10 = arith.constant 0 : index
      %c0_11 = arith.constant 0 : index
      %c0_12 = arith.constant 0 : index
      %11 = vector.load %arg3[%c0_10, %c0_11, %c0_12] : memref<1x8x128xi32, #tpu.memory_space<vmem>>, vector<1x8x128xi32>
      tpu.vector_store %arg3[%c0_10, %c0_11, %c0_12], %10 {strides = array<i32>} : memref<1x8x128xi32, #tpu.memory_space<vmem>>, vector<1x8x128xi32>,
    } else {
    }
    %c0_i32_1 = arith.constant 0 : i32
    %3 = vector.broadcast %c0_i32_1 : i32 to vector<8x128xi32>
    %c0_i32_2 = arith.constant 0 : i32
    %c32_i32 = arith.constant 32 : i32
    %4 = arith.addi %c0_i32_2, %c32_i32 : i32
    %c1_i32 = arith.constant 1 : i32
    %5 = scf.for %arg4 = %c0_i32_2 to %4 step %c1_i32 iter_args(%arg5 = %3) -> (vector<8x128xi32>)  : i32 {
      %c128_i32 = arith.constant 128 : i32
      %10 = arith.muli %arg4, %c128_i32 : i32
      %11 = tpu.assume_multiple %10, 128 : i32
      %12 = arith.index_cast %11 : i32 to index
      %c0_9 = arith.constant 0 : index
      %13 = vector.load %arg2[%12, %c0_9] : memref<4096x128xf32, #tpu.memory_space<vmem>>, vector<128x128xf32>
      %cst = arith.constant 0.000000e+00 : f32
      %14 = vector.broadcast %cst : f32 to vector<128x128xf32>
      %15 = arith.cmpf ogt, %13, %14 : vector<128x128xf32>
      %16 = arith.extui %15 : vector<128x128xi1> to vector<128x128xi32>
      %17 = vector.shape_cast %16 : vector<128x128xi32> to vector<16x8x128xi32>
      %cst_10 = arith.constant dense<0> : vector<8x128xi32>
      %18 = vector.multi_reduction <add>, %17, %cst_10 [0] : vector<16x8x128xi32> to vector<8x128xi32>
      %19 = arith.addi %arg5, %18 : vector<8x128xi32>
      scf.yield %19 : vector<8x128xi32>
    }
    %c32_i32_3 = arith.constant 32 : i32
    %c0 = arith.constant 0 : index
    %c0_4 = arith.constant 0 : index
    %c0_5 = arith.constant 0 : index
    %6 = vector.load %arg3[%c0, %c0_4, %c0_5] : memref<1x8x128xi32, #tpu.memory_space<vmem>>, vector<1x8x128xi32>
    %7 = vector.shape_cast %5 : vector<8x128xi32> to vector<1x8x128xi32>
    %8 = arith.addi %6, %7 : vector<1x8x128xi32>
    %c0_6 = arith.constant 0 : index
    %c0_7 = arith.constant 0 : index
    %c0_8 = arith.constant 0 : index
    %9 = vector.load %arg3[%c0_6, %c0_7, %c0_8] : memref<1x8x128xi32, #tpu.memory_space<vmem>>, vector<1x8x128xi32>
    tpu.vector_store %arg3[%c0_6, %c0_7, %c0_8], %8 {strides = array<i32>} : memref<1x8x128xi32, #tpu.memory_space<vmem>>, vector<1x8x128xi32>,
    return
  }
  func.func @transform_0(%arg0: i32, %arg1: i32) -> (i32, i32) {
    %c1_i32 = arith.constant 1 : i32
    %0 = arith.muli %arg0, %c1_i32 : i32
    %1 = arith.addi %0, %arg1 : i32
    %c0_i32 = arith.constant 0 : i32
    %c0_i32_0 = arith.constant 0 : i32
    return %1, %c0_i32 : i32, i32
  }
  func.func @transform_1(%arg0: i32, %arg1: i32) -> (i32, i32, i32) {
    %c0_i32 = arith.constant 0 : i32
    %c0_i32_0 = arith.constant 0 : i32
    %c0_i32_1 = arith.constant 0 : i32
    return %arg0, %c0_i32, %c0_i32_0 : i32, i32, i32
  }
}

</mosaic_0001>

<bundles_post_ra>
// kernel: tpu_custom_call.1
= control target key start
LH: loop header
LB: loop body
LE: loop exit
PB: predicated region body
PF: predicated region fallthrough
CT: control target
= control target key end

     0   :  { %6 = vsyncpa [#allocation3], 0  ;;  %s291_s0 = inlined_call_operand.hbm [shape: f32[4096,128], index: 0, kind: input, shape index: {}]   ;;  %s292_s1 = inlined_call_operand.hbm [shape: s32[1,8,128], index: 1, kind: output, shape index: {}]  }
   0x1   :  { %7 = vsyncpa [#allocation4], 0  ;;  %s222_s6 = smov [#allocation2]   ;;  %s158_s10 = scalar_lea.hbm %s291_s0, 65536 }
   0x2   :  { %s17_s7 = sshll.u32 %s222_s6, 4  ;;  %p159_p0 = scmp.ne.s32.totalorder %s291_s0, %s158_s10  ;;  %s18_s7 = int_to_ptr.vmem [resolvable:$true] %s17_s7 }
   0x3   :  { %p162_p1 = scmp.lt.u32.totalorder %s158_s10, %s291_s0 }
   0x5   :  { %p164_p2 = pnand %p162_p1, %p159_p0 }
   0x7   :  { %167 = shalt.err (!%p164_p2)
}
   0x8   :  { %s168_s15 = scalar_lea.vmem %s18_s7, 65536  ;;  %p173_p4 = scmp.lt.s32.totalorder %s18_s7, %s18_s7 }
   0x9   :  { %p169_p3 = scmp.ne.s32.totalorder %s18_s7, %s168_s15  ;;  %p174_p5 = scmp.lt.s32.totalorder %s168_s15, %s168_s15 }
   0xb   :  { %p175_p6 = por %p174_p5, %p173_p4 }
   0xd   :  { %p176_p7 = pnand %p175_p6, %p169_p3 }
   0xf   :  { %179 = shalt.err (!%p176_p7)
}
  0x10   :  { %s223_s16 = smov 128   ;;  %s224_s17 = smov 8  }
  0x11   :  { %23 = dma.hbm_to_vmem [thread:$0]  %s291_s0, 65536, %s18_s7, [#allocation3], %s223_s16, %s223_s16, %s224_s17  }
  0x12   :  { %210 = dma.done.wait [#allocation3], 65536  }
  0x13   :  { %211 = vsyncadd [#allocation3], 4294901760  ;;  %v225_v0 = vmov 0   ;;  %v250_v1 = vmov 0   ;;  %s252_s20 = smov 0  }
  0x14   :  { %33 = vst [vmem:[#allocation5] sm:$0xff] %v225_v0 }
  0x15 LB: > { %s135_s21 = sshll.u32 %s220_s20, 7  ;;  %v226_v18 = vmov 0   ;;  %s39_s20 = sadd.s32 1, %s220_s20   ;;  %s220_s20 = sphi %s252_s20, %s39_s20   ;;  %v216_v1 = vphi %v250_v1, %v293_v1  }
  0x16   : > { %s42_s22 = scalar_lea.vmem [#allocation2], %s135_s21  ;;  %p36_p8 = scmp.ge.s32.totalorder %s39_s20, 32  }
  0x17   : > { %v43_v2 = vld [vmem:[%s42_s22] sm:$0xff]  ;;  %v44_v3 = vld [vmem:[%s42_s22 + $0x8] sm:$0xff]  ;;  %v45_v4 = vld [vmem:[%s42_s22 + $0x10] sm:$0xff]  ;;  %s227_s0 = smov (%p36_p8), [#allocation5]  }
  0x18   : > { %v46_v5 = vld [vmem:[%s42_s22 + $0x18] sm:$0xff]  ;;  %v47_v6 = vld [vmem:[%s42_s22 + $0x20] sm:$0xff]  ;;  %v48_v7 = vld [vmem:[%s42_s22 + $0x28] sm:$0xff]  ;;  %vm59_vm0 = vcmp.gt.f32.partialorder %v43_v2, 0.0  ;;  %vm60_vm1 = vcmp.gt.f32.partialorder %v44_v3, 0.0  ;;  %vm61_vm2 = vcmp.gt.f32.partialorder %v45_v4, 0.0 }
  0x19   : > { %v49_v8 = vld [vmem:[%s42_s22 + $0x30] sm:$0xff]  ;;  %v50_v9 = vld [vmem:[%s42_s22 + $0x38] sm:$0xff]  ;;  %v51_v10 = vld [vmem:[%s42_s22 + $0x40] sm:$0xff]  ;;  %vm62_vm3 = vcmp.gt.f32.partialorder %v46_v5, 0.0  ;;  %vm63_vm4 = vcmp.gt.f32.partialorder %v47_v6, 0.0  ;;  %vm64_vm5 = vcmp.gt.f32.partialorder %v48_v7, 0.0 }
  0x1a   : > { %v52_v11 = vld [vmem:[%s42_s22 + $0x48] sm:$0xff]  ;;  %v53_v12 = vld [vmem:[%s42_s22 + $0x50] sm:$0xff]  ;;  %v54_v13 = vld [vmem:[%s42_s22 + $0x58] sm:$0xff]  ;;  %vm65_vm6 = vcmp.gt.f32.partialorder %v49_v8, 0.0  ;;  %vm66_vm7 = vcmp.gt.f32.partialorder %v50_v9, 0.0  ;;  %vm67_vm8 = vcmp.gt.f32.partialorder %v51_v10, 0.0 }
  0x1b   : > { %v55_v14 = vld [vmem:[%s42_s22 + $0x60] sm:$0xff]  ;;  %v56_v15 = vld [vmem:[%s42_s22 + $0x68] sm:$0xff]  ;;  %v57_v16 = vld [vmem:[%s42_s22 + $0x70] sm:$0xff]  ;;  %vm68_vm9 = vcmp.gt.f32.partialorder %v52_v11, 0.0  ;;  %vm69_vm10 = vcmp.gt.f32.partialorder %v53_v12, 0.0  ;;  %vm70_vm11 = vcmp.gt.f32.partialorder %v54_v13, 0.0 }
  0x1c   : > { %v58_v17 = vld [vmem:[%s42_s22 + $0x78] sm:$0xff]  ;;  %v75_v19 = vsel %vm59_vm0, 1, %v226_v18  ;;  %v76_v20 = vsel %vm60_vm1, 1, %v226_v18  ;;  %v77_v21 = vsel %vm61_vm2, 1, %v226_v18  ;;  %v78_v22 = vsel %vm62_vm3, 1, %v226_v18  ;;  %v107_v51 = vld [vmem:[#allocation5] sm:$0xff] (%p36_p8) }
  0x1d   : > { %v79_v23 = vsel %vm63_vm4, 1, %v226_v18  ;;  %v80_v24 = vsel %vm64_vm5, 1, %v226_v18  ;;  %v81_v25 = vsel %vm65_vm6, 1, %v226_v18  ;;  %v82_v26 = vsel %vm66_vm7, 1, %v226_v18  ;;  %s116_s23 = sshll.u32 (%p36_p8), %s227_s0, 4  ;;  %s117_s23 = int_to_ptr.vmem [resolvable:$true] %s116_s23 }
  0x1e   : > { %vm71_vm12 = vcmp.gt.f32.partialorder %v55_v14, 0.0  ;;  %vm72_vm13 = vcmp.gt.f32.partialorder %v56_v15, 0.0  ;;  %vm73_vm14 = vcmp.gt.f32.partialorder %v57_v16, 0.0  ;;  %vm74_vm15 = vcmp.gt.f32.partialorder %v58_v17, 0.0  ;;  %s180_s24 = scalar_lea.vmem (%p36_p8), %s117_s23, 128  ;;  %p185_p10 = scmp.lt.s32.totalorder (%p36_p8), %s117_s23, %s117_s23 }
  0x1f   : > { %v83_v27 = vsel %vm67_vm8, 1, %v226_v18  ;;  %v84_v28 = vsel %vm68_vm9, 1, %v226_v18  ;;  %v85_v29 = vsel %vm69_vm10, 1, %v226_v18  ;;  %v86_v30 = vsel %vm70_vm11, 1, %v226_v18  ;;  %p181_p9 = scmp.ne.s32.totalorder (%p36_p8), %s117_s23, %s180_s24  ;;  %p186_p11 = scmp.lt.s32.totalorder (%p36_p8), %s180_s24, %s180_s24 }
  0x20   : > { %v91_v31 = vadd.s32 %v79_v23, %v75_v19  ;;  %v92_v32 = vadd.s32 %v80_v24, %v76_v20  ;;  %v93_v33 = vadd.s32 %v81_v25, %v77_v21  ;;  %v94_v34 = vadd.s32 %v82_v26, %v78_v22 }
  0x21   : > { %v87_v35 = vsel %vm71_vm12, 1, %v226_v18  ;;  %v88_v36 = vsel %vm72_vm13, 1, %v226_v18  ;;  %v89_v37 = vsel %vm73_vm14, 1, %v226_v18  ;;  %v90_v38 = vsel %vm74_vm15, 1, %v226_v18  ;;  %p187_p12 = por (%p36_p8), %p186_p11, %p185_p10 }
  0x22   : > { %v95_v39 = vadd.s32 %v91_v31, %v83_v27  ;;  %v96_v40 = vadd.s32 %v92_v32, %v84_v28  ;;  %v97_v41 = vadd.s32 %v93_v33, %v85_v29  ;;  %v98_v42 = vadd.s32 %v94_v34, %v86_v30 }
  0x23   :  { %p188_p13 = pnand (%p36_p8), %p187_p12, %p181_p9 }
  0x24   : > { %v99_v43 = vadd.s32 %v95_v39, %v87_v35  ;;  %v100_v44 = vadd.s32 %v96_v40, %v88_v36  ;;  %v101_v45 = vadd.s32 %v97_v41, %v89_v37  ;;  %v102_v46 = vadd.s32 %v98_v42, %v90_v38 }
  0x26   : > { %v103_v47 = vadd.s32 %v100_v44, %v99_v43  ;;  %v104_v48 = vadd.s32 %v102_v46, %v101_v45  ;;  %38 = sbr.rel (!%p36_p8) target bundleno = 21 (0x15), region = 41 }
  0x28   : > { %v105_v49 = vadd.s32 %v104_v48, %v103_v47 }
  0x2a   : > { %v106_v50 = vadd.s32 %v216_v1, %v105_v49  }
  0x2c   : > { %v293_v1 = vmov %v106_v50  ;;  %v108_v52 = vadd.s32 (%p36_p8), %v107_v51, %v106_v50 }
  0x2e   :  { %109 = vst [vmem:[#allocation5] sm:$0xff] %v108_v52 }
  0x2f   :  { %191 = shalt.err (!%p188_p13)
}
  0x30   :  { %s192_s27 = scalar_lea.hbm %s292_s1, 128 }
  0x31   :  { %p193_p0 = scmp.ne.s32.totalorder %s292_s1, %s192_s27  ;;  %p196_p1 = scmp.lt.u32.totalorder %s192_s27, %s292_s1 }
  0x33   :  { %p198_p2 = pnand %p196_p1, %p193_p0 }
  0x35   :  { %201 = shalt.err (!%p198_p2)
}
  0x36   :  { %119 = dma.vmem_to_hbm [thread:$0]  %s117_s23, 128, %s292_s1, [#allocation4]  }
  0x37   :  { %212 = dma.done.wait [#allocation4], 128  }
  0x38   :  { %213 = vsyncadd [#allocation4], 4294967168 }
  0x39   :  { %123 = vsyncpa [#allocation3], 1 }
  0x3a   :  { %124 = vsyncpa [#allocation4], 1 }

</bundles_post_ra>
